<compile_context>
chip_gen: v7x
topology: tpu7x:2x2x1
jax: 0.10.0
libtpu: 0.0.40
codegen_flags: <defaults>
</compile_context>

<pallas_src>
import numpy as np
import jax
import jax.numpy as jnp
from jax.experimental import pallas as pl
from jax.experimental.pallas import tpu as pltpu


# ---------------------------------------------------------------------------
# Host-side construction of the linear operators (done once at init)
# ---------------------------------------------------------------------------
def _adaptive_pool_matrix(out_size, in_size):
    """P[o, i] = 1/window(o) for i in the adaptive-pool window of o (PyTorch rule)."""
    P = np.zeros((out_size, in_size), dtype=np.float32)
    for o in range(out_size):
        start = (o * in_size) // out_size
        end = -(-((o + 1) * in_size) // out_size)  # ceil
        P[o, start:end] = 1.0 / float(end - start)
    return P


def _bilinear_matrix(out_size, in_size):
    """U[o, i]: 1-D bilinear interpolation weights, align_corners=False (PyTorch)."""
    U = np.zeros((out_size, in_size), dtype=np.float32)
    scale = in_size / out_size
    for o in range(out_size):
        src = (o + 0.5) * scale - 0.5
        src = max(src, 0.0)
        i0 = min(int(np.floor(src)), in_size - 1)
        i1 = min(i0 + 1, in_size - 1)
        w1 = src - i0
        U[o, i0] += 1.0 - w1
        U[o, i1] += w1
    return U


def prepare_pyramid_pooling(params, setting, H, W, compute_dtype=jnp.bfloat16, eps=1e-5):
    """Build the stacked operators for all pyramid levels (call once at init)."""
    P_rows, UT_rows = [], []
    for s in setting:
        P_rows.append(np.kron(_adaptive_pool_matrix(s, H), _adaptive_pool_matrix(s, W)))  # (s*s, HW)
        U = np.kron(_bilinear_matrix(H, s), _bilinear_matrix(W, s))                        # (HW, s*s)
        UT_rows.append(U.T)
    P_all = np.concatenate(P_rows, axis=0)      # (S2, HW)
    UT_all = np.concatenate(UT_rows, axis=0)    # (S2, HW)
    S2 = P_all.shape[0]

    # Fold eval-mode BN into the 1x1 conv, stack all levels along output channels.
    W_rows, b_rows = [], []
    for p in params:
        scale = p["gamma"] / jnp.sqrt(p["var"] + eps)        # (R,)
        W_rows.append(p["conv_w"] * scale[:, None])          # (R, C)
        b_rows.append(p["beta"] - p["mean"] * scale)         # (R,)
    W_all = jnp.concatenate(W_rows, axis=0)                  # (L*R, C)
    b_all = jnp.concatenate(b_rows, axis=0)[:, None]         # (L*R, 1)

    R = int(params[0]["conv_w"].shape[0])
    L = len(setting)
    mask = np.zeros((L * R, S2), dtype=np.float32)
    off = 0
    for lvl, s in enumerate(setting):
        mask[lvl * R:(lvl + 1) * R, off:off + s * s] = 1.0
        off += s * s

    return dict(
        pt=jnp.asarray(P_all.T, dtype=compute_dtype),        # (HW, S2) bf16
        ut=jnp.asarray(UT_all, dtype=compute_dtype),          # (S2, HW) bf16
        w=W_all.astype(compute_dtype),                        # (L*R, C) bf16
        b=b_all.astype(jnp.float32),                          # (L*R, 1) f32
        mask=jnp.asarray(mask, dtype=compute_dtype),          # (L*R, S2) bf16
        compute_dtype=compute_dtype,
        R=R, L=L, H=H, W=W,
    )


# ---------------------------------------------------------------------------
# Pallas kernel: ALL pyramid levels + passthrough concat for one batch element
# ---------------------------------------------------------------------------
def _ppm_fused_kernel(x_ref, pt_ref, w_ref, b_ref, mask_ref, ut_ref, o_ref):
    # x_ref:   (1, C, HW)  x.dtype     pt_ref: (HW, S2) bf16
    # w_ref:   (LR, C)     bf16        b_ref:  (LR, 1)  f32
    # mask_ref:(LR, S2)    bf16        ut_ref: (S2, HW) bf16
    # o_ref:   (1, C+LR, HW) x.dtype   (torch.cat([x, ppm...], 1) layout)
    C = x_ref.shape[1]
    LR = w_ref.shape[0]

    x = x_ref[0]                                               # (C, HW), original dtype
    # Passthrough channels of the concat: written straight from the resident
    # input block -> no separate HBM concat pass in the wrapper.
    o_ref[0, pl.ds(0, C), :] = x.astype(o_ref.dtype)

    xc = x.astype(pt_ref.dtype)                                # in-kernel bf16 cast
    pooled = jnp.dot(xc, pt_ref[...], preferred_element_type=jnp.float32)      # (C, S2)
    proj = jnp.dot(w_ref[...], pooled.astype(w_ref.dtype),
                   preferred_element_type=jnp.float32)                          # (LR, S2)
    act = jnp.maximum(proj + b_ref[...], 0.0)                                   # bias + ReLU (f32)
    act = act.astype(ut_ref.dtype) * mask_ref[...]                              # bf16 mask kills cross-level cols
    y = jnp.dot(act, ut_ref[...], preferred_element_type=jnp.float32)           # (LR, HW)
    o_ref[0, pl.ds(C, LR), :] = y.astype(o_ref.dtype)


def _padded_vmem_bytes(shape, dtype, nbuf):
    s = list(shape)
    if len(s) >= 1:
        s[-1] = -(-s[-1] // 128) * 128
    if len(s) >= 2:
        s[-2] = -(-s[-2] // 8) * 8
    return int(np.prod(s)) * jnp.dtype(dtype).itemsize * nbuf


def _ppm_fused(x_flat, pt, w, b, mask, ut):
    N, C, HW = x_flat.shape
    S2 = pt.shape[1]
    LR = w.shape[0]
    out_dtype = x_flat.dtype

    single = pl.Buffered(1)   # grid-invariant operands: no double-buffering

    # Conservative VMEM estimate (count everything double-buffered) + headroom.
    # TODO(synk): pick the cap per generation (<=~56 MiB on v7x, up to ~100 MiB
    #             on v5e/v6e) once production shapes are benchmarked.
    est = (_padded_vmem_bytes((1, C, HW), x_flat.dtype, 2)
           + _padded_vmem_bytes((1, C + LR, HW), out_dtype, 2)
           + _padded_vmem_bytes(pt.shape, pt.dtype, 2)
           + _padded_vmem_bytes(w.shape, w.dtype, 2)
           + _padded_vmem_bytes(b.shape, b.dtype, 2)
           + _padded_vmem_bytes(mask.shape, mask.dtype, 2)
           + _padded_vmem_bytes(ut.shape, ut.dtype, 2))
    vmem_limit = int(min(max(est + 8 * 1024 * 1024, 32 * 1024 * 1024),
                         96 * 1024 * 1024))

    flops = 2 * N * (C * HW * S2 + LR * C * S2 + LR * S2 * HW)
    bytes_accessed = (N * C * HW * jnp.dtype(x_flat.dtype).itemsize
                      + N * (C + LR) * HW * jnp.dtype(out_dtype).itemsize
                      + pt.size * jnp.dtype(pt.dtype).itemsize
                      + w.size * jnp.dtype(w.dtype).itemsize
                      + b.size * jnp.dtype(b.dtype).itemsize
                      + mask.size * jnp.dtype(mask.dtype).itemsize
                      + ut.size * jnp.dtype(ut.dtype).itemsize)

    return pl.pallas_call(
        _ppm_fused_kernel,
        out_shape=jax.ShapeDtypeStruct((N, C + LR, HW), out_dtype),
        grid=(N,),
        in_specs=[
            pl.BlockSpec((1, C, HW), lambda n: (n, 0, 0)),
            pl.BlockSpec((HW, S2), lambda n: (0, 0), pipeline_mode=single),
            pl.BlockSpec((LR, C), lambda n: (0, 0), pipeline_mode=single),
            pl.BlockSpec((LR, 1), lambda n: (0, 0), pipeline_mode=single),
            pl.BlockSpec((LR, S2), lambda n: (0, 0), pipeline_mode=single),
            pl.BlockSpec((S2, HW), lambda n: (0, 0), pipeline_mode=single),
        ],
        out_specs=pl.BlockSpec((1, C + LR, HW), lambda n: (n, 0, 0)),
        compiler_params=pltpu.CompilerParams(
            dimension_semantics=("parallel",),   # batch shards across TCs on v7x
            vmem_limit_bytes=vmem_limit,
        ),
        cost_estimate=pl.CostEstimate(flops=flops, transcendentals=0,
                                      bytes_accessed=bytes_accessed),
    )(x_flat, pt, w, b, mask, ut)


# ---------------------------------------------------------------------------
# Module forward (NCHW in / NCHW out, matching PyTorch: cat([x, ppm...], 1))
# ---------------------------------------------------------------------------
def pyramid_pooling_forward(x_nchw, prep):
    N, C, H, W = x_nchw.shape
    HW = H * W
    x_flat = x_nchw.reshape(N, C, HW)   # no cast / no transpose: HW stays in lanes
    out = _ppm_fused(x_flat, prep["pt"], prep["w"], prep["b"], prep["mask"], prep["ut"])
    return out.reshape(N, C + prep["L"] * prep["R"], H, W)


def pyramid_pooling_reference(x_nchw, prep):
    """Plain-JAX reference using the same stacked operators / casts."""
    N, C, H, W = x_nchw.shape
    HW = H * W
    cdt = prep["compute_dtype"]
    x_flat = x_nchw.reshape(N, C, HW)
    xc = x_flat.astype(cdt)
    pooled = jnp.einsum("nch,hs->ncs", xc, prep["pt"],
                        preferred_element_type=jnp.float32)
    proj = jnp.einsum("rc,ncs->nrs", prep["w"], pooled.astype(cdt),
                      preferred_element_type=jnp.float32)
    act = jnp.maximum(proj + prep["b"][None], 0.0)
    act = act.astype(cdt) * prep["mask"][None]
    y = jnp.einsum("nrs,sh->nrh", act, prep["ut"],
                   preferred_element_type=jnp.float32)
    y = y.reshape(N, prep["L"] * prep["R"], H, W).astype(x_nchw.dtype)
    return jnp.concatenate([x_nchw, y], axis=1)


# ---------------------------------------------------------------------------
if __name__ == "__main__":
    N, C, H, W = 2, 4, 16, 16          # in_dim = 4
    R = 8                               # reduction_dim = 8
    setting = (1, 2, 3, 6)

    key = jax.random.PRNGKey(0)
    keys = jax.random.split(key, 1 + 5 * len(setting))
    x = jax.random.normal(keys[0], (N, C, H, W), dtype=jnp.float32)

    params = []
    it = iter(keys[1:])
    for _ in setting:
        params.append(dict(
            conv_w=0.1 * jax.random.normal(next(it), (R, C), dtype=jnp.float32),   # Conv2d (R,C,1,1)
            gamma=1.0 + 0.1 * jax.random.normal(next(it), (R,), dtype=jnp.float32),
            beta=0.1 * jax.random.normal(next(it), (R,), dtype=jnp.float32),
            mean=0.1 * jax.random.normal(next(it), (R,), dtype=jnp.float32),
            var=1.0 + 0.1 * jnp.abs(jax.random.normal(next(it), (R,), dtype=jnp.float32)),
        ))

    # Build stacked operators ONCE (hoisted out of the forward pass).
    prep = prepare_pyramid_pooling(params, setting, H, W)
    fwd = jax.jit(lambda xx: pyramid_pooling_forward(xx, prep))

    out = jax.block_until_ready(fwd(x))
    expected_channels = C + R * len(setting)
    assert out.shape == (N, expected_channels, H, W), out.shape
    assert out.dtype == x.dtype, out.dtype

    ref = jax.block_until_ready(pyramid_pooling_reference(x, prep))
    np.testing.assert_allclose(np.asarray(out), np.asarray(ref), atol=2e-2, rtol=2e-2)
    # Passthrough channels must be bit-exact copies of x.
    np.testing.assert_array_equal(np.asarray(out[:, :C]), np.asarray(x))

    print("KERNEL_OK")
</pallas_src>

<mosaic_0001>
module attributes {stable_mosaic.version = 11 : i64} {
  func.func @_ppm_fused_kernel(%arg0: i32, %arg1: memref<1x4x256xf32, #tpu.memory_space<vmem>>, %arg2: memref<256x50xbf16, #tpu.memory_space<vmem>>, %arg3: memref<32x4xbf16, #tpu.memory_space<vmem>>, %arg4: memref<32x1xf32, #tpu.memory_space<vmem>>, %arg5: memref<32x50xbf16, #tpu.memory_space<vmem>>, %arg6: memref<50x256xbf16, #tpu.memory_space<vmem>>, %arg7: memref<1x36x256xf32, #tpu.memory_space<vmem>>) attributes {dimension_semantics = [#tpu.dimension_semantics<parallel>], iteration_bounds = array<i64: 2>, scalar_prefetch = 0 : i64, scratch_operands = 0 : i64, tpu.core_type = #tpu.core_type<tc>, window_params = [{transform_indices = @transform_0, window_bounds = array<i64: 1, 4, 256>}, {pipeline_mode = #tpu.pipeline_mode<synchronous>, transform_indices = @transform_1, window_bounds = array<i64: 256, 50>}, {pipeline_mode = #tpu.pipeline_mode<synchronous>, transform_indices = @transform_2, window_bounds = array<i64: 32, 4>}, {pipeline_mode = #tpu.pipeline_mode<synchronous>, transform_indices = @transform_3, window_bounds = array<i64: 32, 1>}, {pipeline_mode = #tpu.pipeline_mode<synchronous>, transform_indices = @transform_4, window_bounds = array<i64: 32, 50>}, {pipeline_mode = #tpu.pipeline_mode<synchronous>, transform_indices = @transform_5, window_bounds = array<i64: 50, 256>}, {transform_indices = @transform_6, window_bounds = array<i64: 1, 36, 256>}]} {
    %c0 = arith.constant 0 : index
    %c0_0 = arith.constant 0 : index
    %c0_1 = arith.constant 0 : index
    %0 = vector.load %arg1[%c0, %c0_0, %c0_1] : memref<1x4x256xf32, #tpu.memory_space<vmem>>, vector<1x4x256xf32>
    %1 = vector.shape_cast %0 : vector<1x4x256xf32> to vector<4x256xf32>
    %c0_2 = arith.constant 0 : index
    %c0_3 = arith.constant 0 : index
    %c0_4 = arith.constant 0 : index
    %2 = vector.load %arg7[%c0_2, %c0_3, %c0_4] : memref<1x36x256xf32, #tpu.memory_space<vmem>>, vector<1x4x256xf32>
    %3 = vector.shape_cast %2 : vector<1x4x256xf32> to vector<4x256xf32>
    %4 = vector.shape_cast %1 : vector<4x256xf32> to vector<1x4x256xf32>
    tpu.vector_store %arg7[%c0_2, %c0_3, %c0_4], %4 {strides = array<i32>} : memref<1x36x256xf32, #tpu.memory_space<vmem>>, vector<1x4x256xf32>,
    %5 = arith.truncf %1 : vector<4x256xf32> to vector<4x256xbf16>
    %c0_5 = arith.constant 0 : index
    %c0_6 = arith.constant 0 : index
    %6 = vector.load %arg2[%c0_5, %c0_6] : memref<256x50xbf16, #tpu.memory_space<vmem>>, vector<256x50xbf16>
    %cst = arith.constant dense<0.000000e+00> : vector<4x50xf32>
    %7 = tpu.matmul %5, %6, %cst {dimension_numbers = #tpu.dot_dimension_numbers<[1], [0], [0], [1], [0, 0, 1, 1], [], []>} : vector<4x256xbf16>, vector<256x50xbf16>, vector<4x50xf32> -> vector<4x50xf32>
    %c0_7 = arith.constant 0 : index
    %c0_8 = arith.constant 0 : index
    %8 = vector.load %arg3[%c0_7, %c0_8] : memref<32x4xbf16, #tpu.memory_space<vmem>>, vector<32x4xbf16>
    %9 = arith.truncf %7 : vector<4x50xf32> to vector<4x50xbf16>
    %cst_9 = arith.constant dense<0.000000e+00> : vector<32x50xf32>
    %10 = tpu.matmul %8, %9, %cst_9 {dimension_numbers = #tpu.dot_dimension_numbers<[1], [0], [0], [1], [0, 0, 1, 1], [], []>} : vector<32x4xbf16>, vector<4x50xbf16>, vector<32x50xf32> -> vector<32x50xf32>
    %c0_10 = arith.constant 0 : index
    %c0_11 = arith.constant 0 : index
    %11 = vector.load %arg4[%c0_10, %c0_11] : memref<32x1xf32, #tpu.memory_space<vmem>>, vector<32x1xf32>
    %12 = vector.broadcast %11 : vector<32x1xf32> to vector<32x50xf32>
    %13 = arith.addf %10, %12 : vector<32x50xf32>
    %cst_12 = arith.constant 0.000000e+00 : f32
    %14 = vector.broadcast %cst_12 : f32 to vector<32x50xf32>
    %15 = arith.maximumf %13, %14 : vector<32x50xf32>
    %16 = arith.truncf %15 : vector<32x50xf32> to vector<32x50xbf16>
    %c0_13 = arith.constant 0 : index
    %c0_14 = arith.constant 0 : index
    %17 = vector.load %arg5[%c0_13, %c0_14] : memref<32x50xbf16, #tpu.memory_space<vmem>>, vector<32x50xbf16>
    %18 = arith.mulf %16, %17 : vector<32x50xbf16>
    %c0_15 = arith.constant 0 : index
    %c0_16 = arith.constant 0 : index
    %19 = vector.load %arg6[%c0_15, %c0_16] : memref<50x256xbf16, #tpu.memory_space<vmem>>, vector<50x256xbf16>
    %cst_17 = arith.constant dense<0.000000e+00> : vector<32x256xf32>
    %20 = tpu.matmul %18, %19, %cst_17 {dimension_numbers = #tpu.dot_dimension_numbers<[1], [0], [0], [1], [0, 0, 1, 1], [], []>} : vector<32x50xbf16>, vector<50x256xbf16>, vector<32x256xf32> -> vector<32x256xf32>
    %c0_18 = arith.constant 0 : index
    %c4 = arith.constant 4 : index
    %c0_19 = arith.constant 0 : index
    %21 = vector.load %arg7[%c0_18, %c4, %c0_19] : memref<1x36x256xf32, #tpu.memory_space<vmem>>, vector<1x32x256xf32>
    %22 = vector.shape_cast %21 : vector<1x32x256xf32> to vector<32x256xf32>
    %23 = vector.shape_cast %20 : vector<32x256xf32> to vector<1x32x256xf32>
    tpu.vector_store %arg7[%c0_18, %c4, %c0_19], %23 {strides = array<i32>} : memref<1x36x256xf32, #tpu.memory_space<vmem>>, vector<1x32x256xf32>,
    return
  }
  func.func @transform_0(%arg0: i32) -> (i32, i32, i32) {
    %c0_i32 = arith.constant 0 : i32
    %c0_i32_0 = arith.constant 0 : i32
    %c0_i32_1 = arith.constant 0 : i32
    return %arg0, %c0_i32, %c0_i32_0 : i32, i32, i32
  }
  func.func @transform_1(%arg0: i32) -> (i32, i32) {
    %c0_i32 = arith.constant 0 : i32
    %c0_i32_0 = arith.constant 0 : i32
    %c0_i32_1 = arith.constant 0 : i32
    return %c0_i32, %c0_i32_0 : i32, i32
  }
  func.func @transform_2(%arg0: i32) -> (i32, i32) {
    %c0_i32 = arith.constant 0 : i32
    %c0_i32_0 = arith.constant 0 : i32
    %c0_i32_1 = arith.constant 0 : i32
    return %c0_i32, %c0_i32_0 : i32, i32
  }
  func.func @transform_3(%arg0: i32) -> (i32, i32) {
    %c0_i32 = arith.constant 0 : i32
    %c0_i32_0 = arith.constant 0 : i32
    %c0_i32_1 = arith.constant 0 : i32
    return %c0_i32, %c0_i32_0 : i32, i32
  }
  func.func @transform_4(%arg0: i32) -> (i32, i32) {
    %c0_i32 = arith.constant 0 : i32
    %c0_i32_0 = arith.constant 0 : i32
    %c0_i32_1 = arith.constant 0 : i32
    return %c0_i32, %c0_i32_0 : i32, i32
  }
  func.func @transform_5(%arg0: i32) -> (i32, i32) {
    %c0_i32 = arith.constant 0 : i32
    %c0_i32_0 = arith.constant 0 : i32
    %c0_i32_1 = arith.constant 0 : i32
    return %c0_i32, %c0_i32_0 : i32, i32
  }
  func.func @transform_6(%arg0: i32) -> (i32, i32, i32) {
    %c0_i32 = arith.constant 0 : i32
    %c0_i32_0 = arith.constant 0 : i32
    %c0_i32_1 = arith.constant 0 : i32
    return %arg0, %c0_i32, %c0_i32_0 : i32, i32, i32
  }
}

</mosaic_0001>

<bundles_post_ra>
// kernel: _lambda_.1
= control target key start
LH: loop header
LB: loop body
LE: loop exit
PB: predicated region body
PF: predicated region fallthrough
CT: control target
= control target key end

     0   :  { %11 = vsyncpa [#allocation3], 0  ;;  %s1349_s0 = inlined_call_operand.vmem [shape: f32[2,4,256], index: 0, kind: input, shape index: {}]   ;;  %s1350_s1 = inlined_call_operand.vmem [shape: bf16[256,50], index: 1, kind: input, shape index: {}]   ;;  %s1351_s2 = inlined_call_operand.hbm [shape: bf16[32,4], index: 2, kind: input, shape index: {}]   ;;  %s1352_s3 = inlined_call_operand.vmem [shape: f32[32,1], index: 3, kind: input, shape index: {}]   ;;  %s1353_s4 = inlined_call_operand.hbm [shape: bf16[32,50], index: 4, kind: input, shape index: {}]   ;;  %s1354_s5 = inlined_call_operand.hbm [shape: bf16[50,256], index: 5, kind: input, shape index: {}]   ;;  %s1355_s6 = inlined_call_operand.vmem [shape: f32[2,36,256], index: 6, kind: output, shape index: {}]  }
   0x1   :  { %12 = vsyncpa [#allocation5], 0  ;;  %s1138_s21 = smov 0  }
   0x2 LB: > { %s1144_s22 = sadd.s32 4294967295, %s1093_s21   ;;  %p836_p0 = scmp.ge.s32.totalorder %s1093_s21, 1  ;;  %s1093_s21 = sphi %s1138_s21, %s18_s21  }
   0x3   : > { %p180_p1 = scmp.lt.s32.totalorder %s1093_s21, 3  ;;  %p939_p2 = scmp.eq.s32.totalorder %s1144_s22, 0 }
   0x4   : > { %s1095_s24 = smov [#allocation4]   ;;  %s1096_s26 = smov [#allocation2]  }
   0x5   : > { %p1149_p3 = pnand %p836_p0, %p180_p1  ;;  %s211_s25 = sshll.u32 %s1095_s24, 4  ;;  %s1153_s25 = int_to_ptr.vmem [resolvable:$true] %s211_s25 }
   0x6   : > { %s195_s27 = sshll.u32 %s1096_s26, 4  ;;  %s1097_s29 = smov [#allocation6]   ;;  %s1157_s27 = int_to_ptr.vmem [resolvable:$true] %s195_s27 }
   0x7   : > { %p929_p4 = pneg %p1149_p3  ;;  %s224_s30 = sshll.u32 %s1097_s29, 4  ;;  %s1165_s30 = int_to_ptr.vmem [resolvable:$true] %s224_s30 }
   0x8   : > { %s995_s9 = scalar_lea.hbm %s1353_s4, 256 }
   0x9   : > { %p1161_p5 = pnand %p939_p2, %p929_p4  ;;  %p996_p6 = scmp.ne.s32.totalorder %s1353_s4, %s995_s9 }
   0xa   : > { %p1002_p10 = scmp.lt.u32.totalorder %s995_s9, %s1353_s4 }
   0xb   : > { %p1175_p7 = pneg %p1161_p5 }
   0xd   : > { %p998_p8 = pnand %p1175_p7, %p996_p6 }
   0xf   : > { %p999_p9 = pneg %p998_p8 }
  0x11   : > { %p1004_p11 = pnand %p1002_p10, %p999_p9 }
  0x13   : > { %1007 = shalt.err (!%p1004_p11)
}
  0x14   : > { %s1008_s15 = scalar_lea.vmem %s1153_s25, 256  ;;  %p1016_p1 = scmp.lt.s32.totalorder %s1153_s25, %s1153_s25 }
  0x15   : > { %p1009_p12 = scmp.ne.s32.totalorder %s1153_s25, %s1008_s15  ;;  %p1017_p4 = scmp.lt.s32.totalorder %s1008_s15, %s1008_s15 }
  0x17   : > { %p1011_p13 = pnand %p1009_p12, %p1175_p7  ;;  %p1018_p6 = por %p1017_p4, %p1016_p1 }
  0x19   : > { %p1012_p0 = pneg %p1011_p13 }
  0x1b   : > { %p1019_p8 = pnand %p1018_p6, %p1012_p0 }
  0x1d   : > { %1022 = shalt.err (!%p1019_p8)
}
  0x1e   : > { %s1098_s16 = smov 64   ;;  %s1099_s17 = smov 4  }
  0x1f   : > { %935 = dma.hbm_to_vmem [thread:$0]  (!%p1161_p5), %s1353_s4, 256, %s1153_s25, [#allocation5], %s1098_s16, %s1098_s16, %s1099_s17  }
  0x20   : > { %s1023_s26 = scalar_lea.hbm %s1351_s2, 256 }
  0x21   : > { %p1024_p9 = scmp.ne.s32.totalorder %s1351_s2, %s1023_s26  ;;  %p1030_p12 = scmp.lt.u32.totalorder %s1023_s26, %s1351_s2 }
  0x23   : > { %p1026_p10 = pnand %p1024_p9, %p1175_p7 }
  0x25   : > { %p1027_p11 = pneg %p1026_p10 }
  0x27   : > { %p1032_p13 = pnand %p1030_p12, %p1027_p11 }
  0x29   : > { %1035 = shalt.err (!%p1032_p13)
}
  0x2a   : > { %s1036_s25 = scalar_lea.vmem %s1157_s27, 256  ;;  %p1044_p6 = scmp.lt.s32.totalorder %s1157_s27, %s1157_s27 }
  0x2b   : > { %p1037_p0 = scmp.ne.s32.totalorder %s1157_s27, %s1036_s25  ;;  %p1045_p8 = scmp.lt.s32.totalorder %s1036_s25, %s1036_s25 }
  0x2d   : > { %p1039_p1 = pnand %p1037_p0, %p1175_p7  ;;  %p1046_p9 = por %p1045_p8, %p1044_p6 }
  0x2f   : > { %p1040_p4 = pneg %p1039_p1 }
  0x31   : > { %p1047_p10 = pnand %p1046_p9, %p1040_p4 }
  0x33   : > { %1050 = shalt.err (!%p1047_p10)
}
  0x34   : > { %932 = dma.hbm_to_vmem [thread:$0]  (!%p1161_p5), %s1351_s2, 256, %s1157_s27, [#allocation3], %s1098_s16, %s1098_s16, %s1099_s17  }
  0x35   : > { %s1051_s15 = scalar_lea.hbm %s1354_s5, 896 }
  0x36   : > { %p1052_p11 = scmp.ne.s32.totalorder %s1354_s5, %s1051_s15  ;;  %p1058_p0 = scmp.lt.u32.totalorder %s1051_s15, %s1354_s5 }
  0x38   : > { %p1054_p12 = pnand %p1052_p11, %p1175_p7 }
  0x3a   : > { %p1055_p13 = pneg %p1054_p12 }
  0x3c   : > { %p1060_p1 = pnand %p1058_p0, %p1055_p13 }
  0x3e   : > { %1063 = shalt.err (!%p1060_p1)
}
  0x3f   : > { %s1064_s27 = scalar_lea.vmem %s1165_s30, 896  ;;  %p1072_p9 = scmp.lt.s32.totalorder %s1165_s30, %s1165_s30 }
  0x40   : > { %p1065_p4 = scmp.ne.s32.totalorder %s1165_s30, %s1064_s27  ;;  %p1073_p10 = scmp.lt.s32.totalorder %s1064_s27, %s1064_s27 }
  0x42   : > { %p1067_p6 = pnand %p1065_p4, %p1175_p7  ;;  %p1074_p11 = por %p1073_p10, %p1072_p9 }
  0x44   : > { %p1068_p8 = pneg %p1067_p6 }
  0x46   : > { %p1075_p12 = pnand %p1074_p11, %p1068_p8 }
  0x48   : > { %1078 = shalt.err (!%p1075_p12)
}
  0x49   : > { %s1100_s16 = smov 128   ;;  %s1101_s17 = smov 8  }
  0x4a   : > { %938 = dma.hbm_to_vmem [thread:$0]  (!%p1161_p5), %s1354_s5, 896, %s1165_s30, [#allocation5], %s1100_s16, %s1100_s16, %s1101_s17  }
  0x4b   : > { %248 = sbr.rel (%p1149_p3) target bundleno = 789 (0x315), region = 44 }
  0x52   : > { %1084 = dma.done.wait (%p939_p2), [#allocation3], 256  }
  0x53   : > { %1086 = vsyncadd (%p939_p2), [#allocation3], 4294967040 }
  0x54   : > { %1088 = dma.done.wait (%p939_p2), [#allocation5], 1152  }
  0x55   : > { %1090 = vsyncadd (%p939_p2), [#allocation5], 4294966144  ;;  %v963_v0 = vld [vmem:[%s1350_s1 + $0x40] sm:$0xff]   ;;  %v965_v2 = vld [vmem:[%s1350_s1 + $0x48] sm:$0xff]   ;;  %p286_p3 = scmp.lt.s32.totalorder %s1144_s22, 1  ;;  %vm512_vm0 = vcmask 31744  }
  0x56   : > { %v964_v1 = vld [vmem:[%s1350_s1] sm:$0xff]   ;;  %884 = vmatprep.subr.bf16.mxu0 %v963_v0  ;;  %v966_v3 = vld [vmem:[%s1350_s1 + $0x8] sm:$0xff]   ;;  %v967_v4 = vld [vmem:[%s1350_s1 + $0x50] sm:$0xff]   ;;  %v1102_v23 = vmov 0   ;;  %vm519_vm1 = vcmask 1041408   ;;  %vm645_vm2 = vcmask 1040384  }
  0x57   : > { %885 = vmatpush3.bf16.msra.mxu0 %v964_v1  ;;  %s1360_s22 = smov (!%p286_p3, %s1144_s22), 1  ;;  %v968_v5 = vld [vmem:[%s1350_s1 + $0x10] sm:$0xff]   ;;  %v969_v6 = vld [vmem:[%s1350_s1 + $0x58] sm:$0xff]   ;;  %v971_v8 = vld [vmem:[%s1350_s1 + $0x60] sm:$0xff]   ;;  %961 = vset.pattern.permute.xlu0 %v1102_v23  ;;  %vm638_vm3 = vcmask 408576   ;;  %vm713_vm4 = vcmask 1043456  }
  0x58   : > { %886 = vmatprep.subr.bf16.mxu0 %v965_v2  ;;  %s883_s19 = sshll.u32 %s1360_s22, 3  ;;  %v970_v7 = vld [vmem:[%s1350_s1 + $0x18] sm:$0xff]   ;;  %s916_s17 = smul.u32 80, %s1360_s22  ;;  %v972_v9 = vld [vmem:[%s1350_s1 + $0x20] sm:$0xff]   ;;  %v973_v10 = vld [vmem:[%s1350_s1 + $0x68] sm:$0xff]   ;;  %962 = vset.pattern.permute.xlu1 %v1102_v23 }
  0x59   : > { %s290_s28 = scalar_lea.vmem %s1349_s0, %s883_s19  ;;  %v974_v12 = vld [vmem:[%s1350_s1 + $0x28] sm:$0xff]   ;;  %v975_v14 = vld [vmem:[%s1350_s1 + $0x70] sm:$0xff]   ;;  %v977_v17 = vld [vmem:[%s1350_s1 + $0x78] sm:$0xff]  }
  0x5a   : > { %s1293_s25 = scalar_lea.vmem %s1355_s6, %s916_s17  ;;  %v297_v11 = vld [vmem:[%s290_s28] sm:$0xff]  ;;  %v976_v16 = vld [vmem:[%s1350_s1 + $0x30] sm:$0xff]   ;;  %v978_v18 = vld [vmem:[%s1350_s1 + $0x38] sm:$0xff]  }
  0x5b   : > { %887 = vmatpush3.bf16.msra.mxu0 %v966_v3  ;;  %v299_v13 = vcombine.high %v297_v11, %v297_v11  ;;  %301 = vst [vmem:[%s1293_s25] sm:$0xf] %v297_v11  ;;  %v303_v19 = vpack.c.bf16 %v297_v11, %v297_v11  ;;  %v980_v20 = vld [vmem:[#allocation2] sm:$0xff]   ;;  %v480_v22 = vld [vmem:[%s1352_s3 + $0x10] sm:$0xff]  ;;  %v479_v24 = vld [vmem:[%s1352_s3 + $0x8] sm:$0xff] }
  0x5c   : > { %888 = vmatprep.subr.bf16.mxu0 %v967_v4  ;;  %911 = vmatprep.mubr.msk.bf16.mxu1 %vm512_vm0, %v980_v20  ;;  %v478_v21 = vld [vmem:[%s1352_s3] sm:$0xff]  ;;  %v481_v25 = vld [vmem:[%s1352_s3 + $0x18] sm:$0xff]  ;;  %v981_v34 = vld [vmem:[#allocation2 + $0x8] sm:$0xff]  }
  0x5d   : > { %302 = vst [vmem:[%s1293_s25 + $0x8] sm:$0xf] %v299_v13  ;;  %v304_v15 = vpack.c.bf16 %v299_v13, %v299_v13  ;;  %484 = vperm.xlu0 %961, %v478_v21   ;;  %494 = vperm.xlu1 %962, %v480_v22   ;;  %v984_v32 = vld [vmem:[#allocation6 + $0x4] ss:$8 sps:$4 sm:$0xff]   ;;  %v982_v35 = vld [vmem:[#allocation6] ss:$8 sps:$4 sm:$0xff]  }
  0x5e   : > { %v987_v36 = vld [vmem:[#allocation6 + $0x14] ss:$8 sps:$4 sm:$0xff]   ;;  %v985_v37 = vld [vmem:[#allocation6 + $0x10] ss:$8 sps:$4 sm:$0xff]   ;;  %v992_v38 = vld [vmem:[#allocation6 + $0x24] ss:$8 sps:$4 sm:$0xff]  }
  0x5f   : > { %889 = vmatpush3.bf16.msra.mxu0 %v968_v5  ;;  %465 = vmatprep.mubr.bf16.mxu0 %v304_v15  ;;  %v990_v39 = vld [vmem:[#allocation6 + $0x20] ss:$8 sps:$4 sm:$0xff]   ;;  %v602_v40 = vld [vmem:[#allocation6 + $0x30] sm:$0x11]  ;;  %v988_v0 = vld [vmem:[#allocation4 + $0x8] sm:$0xff]  }
  0x60   : > { %890 = vmatprep.subr.bf16.mxu0 %v969_v6  ;;  %v877_v41 = vcombine.high %v602_v40, %v602_v40  ;;  %v876_v42 = vcombine.low %v602_v40, %v602_v40  ;;  %v989_v60 = vld [vmem:[#allocation4] sm:$0xff]  }
  0x61   : > { %489 = vperm.xlu0 %961, %v479_v24   ;;  %499 = vperm.xlu1 %962, %v481_v25  }
  0x62   : > { %v647_v43 = vsel %vm645_vm2, %v876_v42, 0 }
  0x63   : > { %891 = vmatpush3.bf16.msra.mxu0 %v970_v7 }
  0x64   : > { %892 = vmatprep.subr.bf16.mxu0 %v971_v8 }
  0x67   : > { %893 = vmatpush3.bf16.msra.mxu0 %v972_v9 }
  0x68   : > { %894 = vmatprep.subr.bf16.mxu0 %v973_v10 }
  0x6b   : > { %895 = vmatpush3.bf16.msra.mxu0 %v974_v12 }
  0x6c   : > { %896 = vmatprep.subr.bf16.mxu0 %v975_v14 }
  0x6f   : > { %897 = vmatpush3.bf16.msra.mxu0 %v976_v16 }
  0x70   : > { %898 = vmatprep.subr.bf16.mxu0 %v977_v17 }
  0x73   : > { %899 = vmatpush3.bf16.msra.mxu0 %v978_v18 }
  0x76   : > { %466 = vmatmul.mubr.bf16.vlgmr.msra.gmra.mrb[0].mxu0 %v303_v19 }
  0xdc   : > { %v495_v44 = vpop.permute.xlu1 %494  ;;  %v485_v45 = vpop.permute.xlu0 %484 }
  0xe0   : > { %v500_v47 = vpop.permute.xlu1 %499  ;;  %v490_v52 = vpop.permute.xlu0 %489 }
 0x149   : > { %v900_v26 = vpop.f32.mrb[0].mxu0 }
 0x14a   : > { %v901_v27 = vpop.f32.mrb[1].mxu0 }
 0x14b   : > { %v902_v28 = vadd.f32 %v901_v27, %v900_v26  ;;  %v903_v29 = vpop.f32.mrb[2].mxu0 }
 0x14c   : > { %v904_v30 = vpop.f32.mrb[3].mxu0 }
 0x14d   : > { %v477_v31 = vpack.c.bf16 %v902_v28, %v902_v28 }
 0x14f   : > { %915 = vmatprep.subr.msk.bf16.mxu1 %vm519_vm1, %v477_v31  ;;  %v521_v33 = vsel %vm519_vm1, %v477_v31, 0 }
 0x150   : > { %910 = vmatpush3.bf16.msra.mxu1 %v521_v33 }
 0x151   : > { %652 = vmatprep.subr.bf16.mxu1 %v984_v32 }
 0x153   : > { %912 = vmatmul.mubr.msk.bf16.vlgmr.msra.gmra.mrb[0].mxu1 %vm512_vm0, %v981_v34 }
 0x154   : > { %653 = vmatpush1.bf16.msra.mxu1 %v982_v35  ;;  %684 = vmatprep.mubr.bf16.mxu1 %v1102_v23 }
 0x155   : > { %654 = vmatprep.subr.bf16.mxu1 %v987_v36 }
 0x158   : > { %655 = vmatpush1.bf16.msra.mxu1 %v985_v37 }
 0x159   : > { %656 = vmatprep.subr.bf16.mxu1 %v992_v38 }
 0x15c   : > { %657 = vmatpush1.bf16.msra.mxu1 %v990_v39 }
 0x15d   : > { %878 = vmatprep.subr.msk.bf16.mxu1 %vm645_vm2, %v877_v41 }
 0x160   : > { %659 = vmatpush1.bf16.msra.mxu1 %v647_v43 }
 0x226   : > { %v913_v46 = vpop.f32.mrb[0].mxu1 }
 0x227   : > { %v566_v48 = vadd.f32 %v913_v46, %v495_v44  ;;  %v557_v49 = vpop.f32.mrb[1].mxu1 }
 0x228   : > { %v558_v50 = vadd.f32 %v557_v49, %v485_v45  ;;  %v914_v51 = vpop.f32.mrb[2].mxu1 }
 0x229   : > { %v569_v53 = vadd.f32 %v914_v51, %v500_v47  ;;  %v560_v54 = vpop.f32.mrb[3].mxu1  ;;  %v574_v56 = vmax.f32 %v566_v48, 0.0 }
 0x22a   : > { %v561_v55 = vadd.f32 %v560_v54, %v490_v52  ;;  %v572_v58 = vmax.f32 %v558_v50, 0.0 }
 0x22b   : > { %v575_v57 = vmax.f32 %v569_v53, 0.0 }
 0x22c   : > { %v573_v59 = vmax.f32 %v561_v55, 0.0 }
 0x22d   : > { %v577_v61 = vpack.c.bf16 %v575_v57, %v574_v56 }
 0x22e   : > { %v576_v62 = vpack.c.bf16 %v573_v59, %v572_v58 }
 0x22f   : > { %v595_v1 = vmul.bf16 %v988_v0, %v577_v61 }
 0x230   : > { %v594_v63 = vmul.bf16 %v989_v60, %v576_v62 }
 0x232   : > { %879 = vmatmul.mubr.msk.bf16.vlgmr.msra.gmra.mrb[4].mxu1 %vm638_vm3, %v594_v63 }
 0x233   : > { %694 = vmatprep.mubr.bf16.mxu1 %v1102_v23 }
 0x23a   : > { %880 = vmatmul.mubr.msk.bf16.gmra.mrb[8].mxu1 %vm638_vm3, %v595_v1 }
 0x305   : > { %v686_v2 = vpop.f32.mrb[4].mxu1 }
 0x306   : > { %v714_v3 = vrot.slane %v686_v2, 4  ;;  %v688_v4 = vpop.f32.mrb[5].mxu1 }
 0x307   : > { %v715_v5 = vrot.slane %v688_v4, 4  ;;  %v690_v6 = vpop.f32.mrb[6].mxu1 }
 0x308   : > { %738 = vst [vmem:[%s1293_s25] sm:$0xf0] %v714_v3  ;;  %v716_v7 = vrot.slane %v690_v6, 4  ;;  %v692_v8 = vpop.f32.mrb[7].mxu1 }
 0x309   : > { %739 = vst [vmem:[%s1293_s25 + $0x8] sm:$0xf0] %v715_v5  ;;  %v718_v9 = vrot.slane %v692_v8, 4 }
 0x30a   : > { %v717_v10 = vsel %vm713_vm4, %v714_v3, %v716_v7 }
 0x30b   : > { %740 = vst [vmem:[%s1293_s25 + $0x10] sm:$0xff] %v717_v10  ;;  %v719_v11 = vsel %vm713_vm4, %v715_v5, %v718_v9 }
 0x30c   : > { %741 = vst [vmem:[%s1293_s25 + $0x18] sm:$0xff] %v719_v11 }
 0x30d   : > { %v696_v12 = vpop.f32.mrb[8].mxu1 }
 0x30e   : > { %v720_v13 = vrot.slane %v696_v12, 4  ;;  %v698_v14 = vpop.f32.mrb[9].mxu1 }
 0x30f   : > { %v722_v15 = vrot.slane %v698_v14, 4  ;;  %v700_v16 = vpop.f32.mrb[10].mxu1 }
 0x310   : > { %v721_v17 = vsel %vm713_vm4, %v716_v7, %v720_v13  ;;  %v724_v18 = vrot.slane %v700_v16, 4  ;;  %v702_v19 = vpop.f32.mrb[11].mxu1 }
 0x311   : > { %742 = vst [vmem:[%s1293_s25 + $0x20] sm:$0xff] %v721_v17  ;;  %v723_v20 = vsel %vm713_vm4, %v718_v9, %v722_v15  ;;  %v726_v21 = vrot.slane %v702_v19, 4 }
 0x312   : > { %743 = vst [vmem:[%s1293_s25 + $0x28] sm:$0xff] %v723_v20  ;;  %v725_v22 = vsel %vm713_vm4, %v720_v13, %v724_v18  ;;  %746 = vst [vmem:[%s1293_s25 + $0x40] sm:$0xf] %v724_v18 }
 0x313   : > { %744 = vst [vmem:[%s1293_s25 + $0x30] sm:$0xff] %v725_v22  ;;  %v727_v23 = vsel %vm713_vm4, %v722_v15, %v726_v21  ;;  %747 = vst [vmem:[%s1293_s25 + $0x48] sm:$0xf] %v726_v21 }
 0x314   : > { %745 = vst [vmem:[%s1293_s25 + $0x38] sm:$0xff] %v727_v23 }
 0x315 PF: > { %s18_s21 = sadd.s32 1, %s1093_s21  }
 0x316   : > { %p15_p2 = scmp.ge.s32.totalorder %s18_s21, 4  }
 0x318   :  { %17 = sbr.rel (!%p15_p2) target bundleno = 2 (0x2), region = 87 }
 0x31f   :  { %769 = vsyncpa [#allocation3], 1 }
 0x320   :  { %771 = vsyncpa [#allocation3 + $0x1], 1 }
 0x321   :  { %772 = vsyncpa [#allocation5], 1 }

</bundles_post_ra>
